<compile_context>
chip_gen: v7x
topology: tpu7x:2x2x1
jax: 0.10.0
libtpu: 0.0.40
codegen_flags: <defaults>
</compile_context>

<pallas_src>
import numpy as np
import jax
import jax.numpy as jnp
from jax.experimental import pallas as pl
from jax.experimental.pallas import tpu as pltpu


def _pick_hw_tile(hw_pad, bs, cap=2048):
    """Largest multiple-of-128 divisor of hw_pad that is <= cap.

    Prefers a tile that leaves at least 2 grid steps (bs * n_t >= 2) so both
    v7x TensorCores / the software pipeline always get work.  cap=2048 keeps
    the double-buffered per-step working set (bf16 input tile + bf16/f32 output
    tiles + Mosaic f32 intermediates) well under v7x's 64 MiB VMEM even for
    cin=512-1024, and inside the explicit vmem limit on v5e/v6e.
    """
    assert hw_pad % 128 == 0
    cap = max(128, min(cap, hw_pad))
    cap -= cap % 128
    for need_two_steps in (True, False):
        for t in range(cap, 127, -128):
            if hw_pad % t == 0 and (not need_two_steps or bs * (hw_pad // t) >= 2):
                return t
    return 128


def make_detect_layer_kernel(stride, with_raw):
    """Per-layer kernel: 1x1 conv (MXU matmul) + YOLO sigmoid/box decode."""
    stride_f = float(stride)

    def kernel(x_ref, w_ref, b_ref, av_ref, g2_ref, mxy_ref, mwh_ref, gxy_ref,
               *out_refs):
        if with_raw:
            raw_ref, dec_ref = out_refs
        else:
            (dec_ref,) = out_refs

        x = x_ref[0]                                    # (Cin, T_HW)   bf16
        w = w_ref[...]                                  # (NAOp, Cin)   bf16

        # 1x1 conv == (NAOp, Cin) @ (Cin, T_HW) matmul on the MXU, f32 accumulate.
        acc = jnp.dot(w, x, preferred_element_type=jnp.float32) + b_ref[...]
        if with_raw:
            raw_ref[0] = acc.astype(raw_ref.dtype)      # pre-sigmoid conv output (bf16)

        # Sigmoid on the EUP: exp + approximate reciprocal (keeps the divide off
        # the VPU; error ~1e-4, far inside the test tolerance).
        e = jnp.exp(-acc)
        s = pl.reciprocal(1.0 + e, approx=True)         # (NAOp, T_HW) f32

        # Per-channel grid offset via the otherwise-idle MXU:
        # (NAOp, 2)[mx | my] @ (2, T_HW)[gx ; gy]  ->  gx on x-rows, gy on y-rows, 0 elsewhere.
        gridval = jnp.dot(g2_ref[...], gxy_ref[...],
                          preferred_element_type=jnp.float32)

        s2 = s * 2.0
        xy_term = (s2 + gridval) * stride_f
        wh_term = s2 * s2 * av_ref[...]                 # av = anchor*stride on wh rows

        m_xy = mxy_ref[...] > 0.5                       # (NAOp, 1) channel masks
        m_wh = mwh_ref[...] > 0.5
        dec = jnp.where(m_xy, xy_term, jnp.where(m_wh, wh_term, s))
        dec_ref[0] = dec.astype(dec_ref.dtype)

    return kernel


def detect_layer_pallas(x_flat, w, b, av, g2, mxy, mwh, gxy, stride,
                        with_raw=True):
    """One detection layer.

    x_flat: (bs, Cin, HW_pad) bf16 (NCHW feature map, spatially flattened+padded)
    w:      (NAOp, Cin)   bf16
    b, av, mxy, mwh: (NAOp, 1) f32 per-output-channel constants
    g2:     (NAOp, 2) f32 [mx | my] columns
    gxy:    (2, HW_pad) f32 [gx ; gy] grid-offset rows
    Returns (raw_bf16, dec_f32) or (dec_f32,) of shape (bs, NAOp, HW_pad).
    """
    bs, cin, hw_pad = x_flat.shape
    nao_p = w.shape[0]
    t_hw = _pick_hw_tile(hw_pad, bs)
    n_t = hw_pad // t_hw

    kernel = make_detect_layer_kernel(stride, with_raw)

    flops = 2 * bs * hw_pad * cin * nao_p + 14 * bs * hw_pad * nao_p
    out_bytes = bs * hw_pad * nao_p * (4 + (2 if with_raw else 0))
    bytes_accessed = (x_flat.size * 2 + w.size * 2 + out_bytes
                      + 4 * nao_p * 4 + nao_p * 2 * 4 + 2 * hw_pad * 4)

    const_spec = pl.BlockSpec((nao_p, 1), lambda bi, ti: (0, 0))
    in_specs = [
        pl.BlockSpec((1, cin, t_hw), lambda bi, ti: (bi, 0, ti)),   # x tile
        pl.BlockSpec((nao_p, cin), lambda bi, ti: (0, 0)),          # weight
        const_spec,                                                 # bias
        const_spec,                                                 # anchor*stride
        pl.BlockSpec((nao_p, 2), lambda bi, ti: (0, 0)),            # [mx|my]
        const_spec,                                                 # xy mask
        const_spec,                                                 # wh mask
        pl.BlockSpec((2, t_hw), lambda bi, ti: (0, ti)),            # [gx;gy]
    ]
    out_block = pl.BlockSpec((1, nao_p, t_hw), lambda bi, ti: (bi, 0, ti))
    out_shapes, out_specs = [], []
    if with_raw:
        out_shapes.append(jax.ShapeDtypeStruct((bs, nao_p, hw_pad), jnp.bfloat16))
        out_specs.append(out_block)
    out_shapes.append(jax.ShapeDtypeStruct((bs, nao_p, hw_pad), jnp.float32))
    out_specs.append(out_block)

    # Per-step working set: double-buffered in/out tiles + headroom for Mosaic's
    # f32 elementwise intermediates; clamp to [32, 48] MiB (safe on v5e/v6e's
    # 128 MiB and under v7x's 64 MiB physical VMEM).
    step_bytes = (cin * t_hw * 2 + nao_p * t_hw * 6) * 2 + 8 * nao_p * t_hw * 4
    vmem_limit = int(min(max(step_bytes, 32 * 1024 * 1024), 48 * 1024 * 1024))

    outs = pl.pallas_call(
        kernel,
        out_shape=tuple(out_shapes),
        grid=(bs, n_t),
        in_specs=in_specs,
        out_specs=tuple(out_specs),
        compiler_params=pltpu.CompilerParams(
            dimension_semantics=("parallel", "parallel"),
            vmem_limit_bytes=vmem_limit),
        cost_estimate=pl.CostEstimate(
            flops=int(flops),
            transcendentals=int(bs * hw_pad * nao_p),
            bytes_accessed=int(bytes_accessed)),
    )(x_flat, w, b, av, g2, mxy, mwh, gxy)
    if not isinstance(outs, (tuple, list)):
        outs = (outs,)
    return tuple(outs)


class DetectPallas:
    """JAX/Pallas port of YOLOv5 Detect head (inference/eval mode)."""

    def __init__(self, nc, anchors, ch, stride, key):
        self.nc = nc
        self.no = nc + 5
        self.nl = len(anchors)
        self.na = len(anchors[0]) // 2
        self.ch = tuple(ch)
        self.anchors = jnp.asarray(anchors, jnp.float32).reshape(self.nl, -1, 2)
        self.stride = jnp.asarray(stride, jnp.float32)
        self.stride_np = np.asarray(stride, np.float32)

        nao = self.na * self.no
        self.nao = nao
        # Pad the fused (anchor*output) channel axis to a multiple of 16 so the
        # bf16 weight / conv-output tiles pack cleanly into (16,128) vregs.
        nao_p = int(-(-nao // 16) * 16)
        self.nao_pad = nao_p

        anchors_np = np.asarray(anchors, np.float32).reshape(self.nl, -1, 2)

        self.weights = []   # original f32 (nao, cin), bias (nao,)  (reference)
        self.w_pads = []    # bf16 (nao_p, cin)  padded conv weights
        self.b_cols = []    # f32  (nao_p, 1)    padded biases
        self.av_cols = []   # f32  (nao_p, 1)    anchor*stride on wh channels
        for li, c in enumerate(ch):
            key, k1, k2 = jax.random.split(key, 3)
            W = jax.random.normal(k1, (nao, c), jnp.float32) * 0.1
            b = jax.random.normal(k2, (nao,), jnp.float32) * 0.1
            self.weights.append((W, b))

            w_pad = jnp.zeros((nao_p, c), jnp.float32).at[:nao].set(W)
            self.w_pads.append(w_pad.astype(jnp.bfloat16))
            self.b_cols.append(jnp.zeros((nao_p, 1), jnp.float32).at[:nao, 0].set(b))

            av = np.zeros((nao_p, 1), np.float32)
            for a in range(self.na):
                av[a * self.no + 2, 0] = anchors_np[li, a, 0] * self.stride_np[li]
                av[a * self.no + 3, 0] = anchors_np[li, a, 1] * self.stride_np[li]
            self.av_cols.append(jnp.asarray(av))

        # Per-output-channel decode masks (channel c = a*no + o), shared by layers.
        o_idx = np.arange(nao_p) % self.no
        valid = np.arange(nao_p) < nao
        mx = ((o_idx == 0) & valid).astype(np.float32)
        my = ((o_idx == 1) & valid).astype(np.float32)
        self.g2 = jnp.asarray(np.stack([mx, my], axis=1))            # (nao_p, 2)
        self.mxy_col = jnp.asarray((mx + my).reshape(nao_p, 1))
        self.mwh_col = jnp.asarray(
            (((o_idx == 2) | (o_idx == 3)) & valid).astype(np.float32).reshape(nao_p, 1))

    @staticmethod
    def _grid_rows(ny, nx, hw_pad):
        """(2, hw_pad) rows of per-position (x - 0.5), (y - 0.5), zero-padded."""
        yv, xv = np.meshgrid(np.arange(ny, dtype=np.float32),
                             np.arange(nx, dtype=np.float32), indexing='ij')
        gxy = np.zeros((2, hw_pad), np.float32)
        gxy[0, :ny * nx] = xv.reshape(-1) - 0.5
        gxy[1, :ny * nx] = yv.reshape(-1) - 0.5
        return jnp.asarray(gxy)

    def __call__(self, xs, with_raw=True):
        """xs: list of NCHW feature maps.

        Returns (z, x_raw_list) like eval-mode Detect (raw list in bf16), or
        just z when with_raw=False (saves the raw HBM writeback entirely).
        """
        na, no, nao = self.na, self.no, self.nao
        z, raws = [], []
        for i, x in enumerate(xs):
            bs, cin, ny, nx = x.shape
            hw = ny * nx
            hw_pad = int(-(-hw // 128) * 128)
            # NCHW -> (bs, Cin, HW): free reshape; pad HW to a multiple of 128 and
            # cast to bf16 in one fused XLA pass (no extra HBM sweep vs the cast).
            x_flat = x.reshape(bs, cin, hw)
            if hw_pad != hw:
                x_flat = jnp.pad(x_flat, ((0, 0), (0, 0), (0, hw_pad - hw)))
            x_flat = x_flat.astype(jnp.bfloat16)
            gxy = self._grid_rows(ny, nx, hw_pad)

            outs = detect_layer_pallas(
                x_flat, self.w_pads[i], self.b_cols[i], self.av_cols[i],
                self.g2, self.mxy_col, self.mwh_col, gxy,
                float(self.stride_np[i]), with_raw=with_raw)
            if with_raw:
                raw, dec = outs
            else:
                (dec,) = outs

            dec = dec[:, :nao, :hw]   # drop padded channels / padded spatial cols
            # dec[b, a*no+o, p] -> (bs, na*hw, no)
            # TODO(synk): for real YOLO heads (no >= ~64) this (no, hw) -> (hw, no)
            # permute could be fused in-kernel on the XLU (emit (bs, na, hw, no));
            # at the test's no=8 the masked stores lose, so it is left to XLA.
            z.append(dec.reshape(bs, na, no, hw).transpose(0, 1, 3, 2)
                        .reshape(bs, na * hw, no))

            if with_raw:
                raw = raw[:, :nao, :hw]
                # raw[b, a*no+o, y*nx+x] -> (bs, na, ny, nx, no); kept in bf16 so the
                # XLA permute moves half the bytes.
                raws.append(raw.reshape(bs, na, no, ny, nx).transpose(0, 1, 3, 4, 2))

        # TODO(synk): the nl per-layer pallas_calls could be fused into one call via
        # PrefetchScalarGridSpec (per-layer offsets/cin/stride in SMEM) to amortize
        # launch overhead on the small P4/P5 maps; kept per-layer for clarity.
        zc = jnp.concatenate(z, axis=1)
        return (zc, raws) if with_raw else zc


def reference_detect(xs, det: DetectPallas):
    """Pure-JAX mirror of the PyTorch eval-mode forward, for verification.

    Activations and conv weights are bf16-quantized (then computed in f32) to
    match the kernel's deployment precision, so the comparison isolates kernel
    correctness from the intended bf16 input quantization.
    """
    na, no = det.na, det.no
    z, raws = [], []
    for i, x in enumerate(xs):
        W, b = det.weights[i]
        Wq = W.astype(jnp.bfloat16).astype(jnp.float32)
        xq = x.astype(jnp.bfloat16).astype(jnp.float32)
        bs, cin, ny, nx = x.shape
        y = jnp.einsum('bchw,oc->bohw', xq, Wq) + b[None, :, None, None]
        y = y.reshape(bs, na, no, ny, nx).transpose(0, 1, 3, 4, 2)   # (bs,na,ny,nx,no)
        raws.append(y)
        s = jax.nn.sigmoid(y)
        yv, xv = jnp.meshgrid(jnp.arange(ny, dtype=jnp.float32),
                              jnp.arange(nx, dtype=jnp.float32), indexing='ij')
        grid = jnp.stack((xv, yv), 2)[None, None] - 0.5               # (1,1,ny,nx,2)
        anchor_grid = (det.anchors[i] * det.stride[i]).reshape(1, na, 1, 1, 2)
        xy = (s[..., 0:2] * 2.0 + grid) * det.stride[i]
        wh = (s[..., 2:4] * 2.0) ** 2 * anchor_grid
        conf = s[..., 4:]
        yy = jnp.concatenate((xy, wh, conf), axis=-1)
        z.append(yy.reshape(bs, na * ny * nx, no))
    return jnp.concatenate(z, axis=1), raws


if __name__ == "__main__":
    # Small synthetic configuration consistent with Detect.__init__
    nc = 3                                   # -> no = nc + 5 = 8
    anchors = ((10, 13, 16, 30, 33, 23),     # nl = 2 layers, na = 3 anchors each
               (30, 61, 62, 45, 59, 119))
    ch = (4, 8)
    stride = (8.0, 16.0)

    key = jax.random.PRNGKey(0)
    key, kd, kx0, kx1 = jax.random.split(key, 4)
    det = DetectPallas(nc, anchors, ch, stride, kd)

    # NCHW inputs (PyTorch convention); second map (8x8=64) exercises the hw->128 pad path.
    x0 = jax.random.normal(kx0, (2, 4, 16, 16), jnp.float32)
    x1 = jax.random.normal(kx1, (2, 8, 8, 8), jnp.float32)
    xs = [x0, x1]

    z, raw_list = det(xs)
    z = jax.block_until_ready(z)
    raw_list = [jax.block_until_ready(r) for r in raw_list]

    # Verify against the pure-JAX reference (same bf16 input quantization).
    z_ref, raw_ref = reference_detect(xs, det)
    np.testing.assert_allclose(np.asarray(z, np.float32), np.asarray(z_ref, np.float32),
                               rtol=2e-2, atol=2e-2)
    for a, b in zip(raw_list, raw_ref):
        np.testing.assert_allclose(np.asarray(a.astype(jnp.float32)),
                                   np.asarray(b, np.float32), rtol=2e-2, atol=2e-2)

    # Raw-free fast path (skips the raw HBM writeback entirely).
    z_only = jax.block_until_ready(det(xs, with_raw=False))
    np.testing.assert_allclose(np.asarray(z_only, np.float32),
                               np.asarray(z, np.float32), rtol=1e-6, atol=1e-6)

    assert z.shape == (2, det.na * (16 * 16 + 8 * 8), det.no)
    assert raw_list[0].shape == (2, det.na, 16, 16, det.no)
    assert raw_list[1].shape == (2, det.na, 8, 8, det.no)

    print("KERNEL_OK")
</pallas_src>

<mosaic_0001>
module attributes {stable_mosaic.version = 11 : i64} {
  func.func @kernel(%arg0: i32, %arg1: i32, %arg2: memref<1x4x256xbf16, #tpu.memory_space<vmem>>, %arg3: memref<32x4xbf16, #tpu.memory_space<vmem>>, %arg4: memref<32x1xf32, #tpu.memory_space<vmem>>, %arg5: memref<32x1xf32, #tpu.memory_space<vmem>>, %arg6: memref<32x2xf32, #tpu.memory_space<vmem>>, %arg7: memref<32x1xf32, #tpu.memory_space<vmem>>, %arg8: memref<32x1xf32, #tpu.memory_space<vmem>>, %arg9: memref<2x256xf32, #tpu.memory_space<vmem>>, %arg10: memref<1x32x256xbf16, #tpu.memory_space<vmem>>, %arg11: memref<1x32x256xf32, #tpu.memory_space<vmem>>) attributes {dimension_semantics = [#tpu.dimension_semantics<parallel>, #tpu.dimension_semantics<parallel>], iteration_bounds = array<i64: 2, 1>, scalar_prefetch = 0 : i64, scratch_operands = 0 : i64, tpu.core_type = #tpu.core_type<tc>, window_params = [{transform_indices = @transform_0, window_bounds = array<i64: 1, 4, 256>}, {pipeline_mode = #tpu.pipeline_mode<synchronous>, transform_indices = @transform_1, window_bounds = array<i64: 32, 4>}, {pipeline_mode = #tpu.pipeline_mode<synchronous>, transform_indices = @transform_2, window_bounds = array<i64: 32, 1>}, {pipeline_mode = #tpu.pipeline_mode<synchronous>, transform_indices = @transform_3, window_bounds = array<i64: 32, 1>}, {pipeline_mode = #tpu.pipeline_mode<synchronous>, transform_indices = @transform_4, window_bounds = array<i64: 32, 2>}, {pipeline_mode = #tpu.pipeline_mode<synchronous>, transform_indices = @transform_5, window_bounds = array<i64: 32, 1>}, {pipeline_mode = #tpu.pipeline_mode<synchronous>, transform_indices = @transform_6, window_bounds = array<i64: 32, 1>}, {transform_indices = @transform_7, window_bounds = array<i64: 2, 256>}, {transform_indices = @transform_8, window_bounds = array<i64: 1, 32, 256>}, {transform_indices = @transform_9, window_bounds = array<i64: 1, 32, 256>}]} {
    %c0 = arith.constant 0 : index
    %c0_0 = arith.constant 0 : index
    %c0_1 = arith.constant 0 : index
    %0 = vector.load %arg2[%c0, %c0_0, %c0_1] : memref<1x4x256xbf16, #tpu.memory_space<vmem>>, vector<1x4x256xbf16>
    %1 = vector.shape_cast %0 : vector<1x4x256xbf16> to vector<4x256xbf16>
    %c0_2 = arith.constant 0 : index
    %c0_3 = arith.constant 0 : index
    %2 = vector.load %arg3[%c0_2, %c0_3] : memref<32x4xbf16, #tpu.memory_space<vmem>>, vector<32x4xbf16>
    %cst = arith.constant dense<0.000000e+00> : vector<32x256xf32>
    %3 = tpu.matmul %2, %1, %cst {dimension_numbers = #tpu.dot_dimension_numbers<[1], [0], [0], [1], [0, 0, 1, 1], [], []>} : vector<32x4xbf16>, vector<4x256xbf16>, vector<32x256xf32> -> vector<32x256xf32>
    %c0_4 = arith.constant 0 : index
    %c0_5 = arith.constant 0 : index
    %4 = vector.load %arg4[%c0_4, %c0_5] : memref<32x1xf32, #tpu.memory_space<vmem>>, vector<32x1xf32>
    %5 = vector.broadcast %4 : vector<32x1xf32> to vector<32x256xf32>
    %6 = arith.addf %3, %5 : vector<32x256xf32>
    %7 = arith.truncf %6 : vector<32x256xf32> to vector<32x256xbf16>
    %c0_6 = arith.constant 0 : index
    %c0_7 = arith.constant 0 : index
    %c0_8 = arith.constant 0 : index
    %8 = vector.load %arg10[%c0_6, %c0_7, %c0_8] : memref<1x32x256xbf16, #tpu.memory_space<vmem>>, vector<1x32x256xbf16>
    %9 = vector.shape_cast %8 : vector<1x32x256xbf16> to vector<32x256xbf16>
    %10 = vector.shape_cast %7 : vector<32x256xbf16> to vector<1x32x256xbf16>
    tpu.vector_store %arg10[%c0_6, %c0_7, %c0_8], %10 {strides = array<i32>} : memref<1x32x256xbf16, #tpu.memory_space<vmem>>, vector<1x32x256xbf16>,
    %cst_9 = arith.constant 0.000000e+00 : f32
    %11 = vector.broadcast %cst_9 : f32 to vector<32x256xf32>
    %12 = arith.subf %11, %6 : vector<32x256xf32>
    %13 = math.exp %12 : vector<32x256xf32>
    %cst_10 = arith.constant 1.000000e+00 : f32
    %14 = vector.broadcast %cst_10 : f32 to vector<32x256xf32>
    %15 = arith.addf %14, %13 : vector<32x256xf32>
    %16 = tpu.reciprocal %15 {approx = true} : vector<32x256xf32> -> vector<32x256xf32>
    %c0_11 = arith.constant 0 : index
    %c0_12 = arith.constant 0 : index
    %17 = vector.load %arg6[%c0_11, %c0_12] : memref<32x2xf32, #tpu.memory_space<vmem>>, vector<32x2xf32>
    %c0_13 = arith.constant 0 : index
    %c0_14 = arith.constant 0 : index
    %18 = vector.load %arg9[%c0_13, %c0_14] : memref<2x256xf32, #tpu.memory_space<vmem>>, vector<2x256xf32>
    %cst_15 = arith.constant dense<0.000000e+00> : vector<32x256xf32>
    %19 = tpu.matmul %17, %18, %cst_15 {dimension_numbers = #tpu.dot_dimension_numbers<[1], [0], [0], [1], [0, 0, 1, 1], [], []>} : vector<32x2xf32>, vector<2x256xf32>, vector<32x256xf32> -> vector<32x256xf32>
    %cst_16 = arith.constant 2.000000e+00 : f32
    %20 = vector.broadcast %cst_16 : f32 to vector<32x256xf32>
    %21 = arith.mulf %16, %20 : vector<32x256xf32>
    %22 = arith.addf %21, %19 : vector<32x256xf32>
    %cst_17 = arith.constant 8.000000e+00 : f32
    %23 = vector.broadcast %cst_17 : f32 to vector<32x256xf32>
    %24 = arith.mulf %22, %23 : vector<32x256xf32>
    %25 = arith.mulf %21, %21 : vector<32x256xf32>
    %c0_18 = arith.constant 0 : index
    %c0_19 = arith.constant 0 : index
    %26 = vector.load %arg5[%c0_18, %c0_19] : memref<32x1xf32, #tpu.memory_space<vmem>>, vector<32x1xf32>
    %27 = vector.broadcast %26 : vector<32x1xf32> to vector<32x256xf32>
    %28 = arith.mulf %25, %27 : vector<32x256xf32>
    %c0_20 = arith.constant 0 : index
    %c0_21 = arith.constant 0 : index
    %29 = vector.load %arg7[%c0_20, %c0_21] : memref<32x1xf32, #tpu.memory_space<vmem>>, vector<32x1xf32>
    %cst_22 = arith.constant 5.000000e-01 : f32
    %30 = vector.broadcast %cst_22 : f32 to vector<32x1xf32>
    %31 = arith.cmpf ogt, %29, %30 : vector<32x1xf32>
    %c0_23 = arith.constant 0 : index
    %c0_24 = arith.constant 0 : index
    %32 = vector.load %arg8[%c0_23, %c0_24] : memref<32x1xf32, #tpu.memory_space<vmem>>, vector<32x1xf32>
    %cst_25 = arith.constant 5.000000e-01 : f32
    %33 = vector.broadcast %cst_25 : f32 to vector<32x1xf32>
    %34 = arith.cmpf ogt, %32, %33 : vector<32x1xf32>
    %35 = vector.shape_cast %34 : vector<32x1xi1> to vector<32x1xi1>
    %36 = vector.broadcast %35 : vector<32x1xi1> to vector<32x256xi1>
    %37 = arith.select %36, %28, %16 : vector<32x256xi1>, vector<32x256xf32>
    %38 = vector.shape_cast %31 : vector<32x1xi1> to vector<32x1xi1>
    %39 = vector.broadcast %38 : vector<32x1xi1> to vector<32x256xi1>
    %40 = arith.select %39, %24, %37 : vector<32x256xi1>, vector<32x256xf32>
    %c0_26 = arith.constant 0 : index
    %c0_27 = arith.constant 0 : index
    %c0_28 = arith.constant 0 : index
    %41 = vector.load %arg11[%c0_26, %c0_27, %c0_28] : memref<1x32x256xf32, #tpu.memory_space<vmem>>, vector<1x32x256xf32>
    %42 = vector.shape_cast %41 : vector<1x32x256xf32> to vector<32x256xf32>
    %43 = vector.shape_cast %40 : vector<32x256xf32> to vector<1x32x256xf32>
    tpu.vector_store %arg11[%c0_26, %c0_27, %c0_28], %43 {strides = array<i32>} : memref<1x32x256xf32, #tpu.memory_space<vmem>>, vector<1x32x256xf32>,
    return
  }
  func.func @transform_0(%arg0: i32, %arg1: i32) -> (i32, i32, i32) {
    %c0_i32 = arith.constant 0 : i32
    %c0_i32_0 = arith.constant 0 : i32
    return %arg0, %c0_i32, %arg1 : i32, i32, i32
  }
  func.func @transform_1(%arg0: i32, %arg1: i32) -> (i32, i32) {
    %c0_i32 = arith.constant 0 : i32
    %c0_i32_0 = arith.constant 0 : i32
    %c0_i32_1 = arith.constant 0 : i32
    return %c0_i32, %c0_i32_0 : i32, i32
  }
  func.func @transform_2(%arg0: i32, %arg1: i32) -> (i32, i32) {
    %c0_i32 = arith.constant 0 : i32
    %c0_i32_0 = arith.constant 0 : i32
    %c0_i32_1 = arith.constant 0 : i32
    return %c0_i32, %c0_i32_0 : i32, i32
  }
  func.func @transform_3(%arg0: i32, %arg1: i32) -> (i32, i32) {
    %c0_i32 = arith.constant 0 : i32
    %c0_i32_0 = arith.constant 0 : i32
    %c0_i32_1 = arith.constant 0 : i32
    return %c0_i32, %c0_i32_0 : i32, i32
  }
  func.func @transform_4(%arg0: i32, %arg1: i32) -> (i32, i32) {
    %c0_i32 = arith.constant 0 : i32
    %c0_i32_0 = arith.constant 0 : i32
    %c0_i32_1 = arith.constant 0 : i32
    return %c0_i32, %c0_i32_0 : i32, i32
  }
  func.func @transform_5(%arg0: i32, %arg1: i32) -> (i32, i32) {
    %c0_i32 = arith.constant 0 : i32
    %c0_i32_0 = arith.constant 0 : i32
    %c0_i32_1 = arith.constant 0 : i32
    return %c0_i32, %c0_i32_0 : i32, i32
  }
  func.func @transform_6(%arg0: i32, %arg1: i32) -> (i32, i32) {
    %c0_i32 = arith.constant 0 : i32
    %c0_i32_0 = arith.constant 0 : i32
    %c0_i32_1 = arith.constant 0 : i32
    return %c0_i32, %c0_i32_0 : i32, i32
  }
  func.func @transform_7(%arg0: i32, %arg1: i32) -> (i32, i32) {
    %c0_i32 = arith.constant 0 : i32
    %c0_i32_0 = arith.constant 0 : i32
    return %c0_i32, %arg1 : i32, i32
  }
  func.func @transform_8(%arg0: i32, %arg1: i32) -> (i32, i32, i32) {
    %c0_i32 = arith.constant 0 : i32
    %c0_i32_0 = arith.constant 0 : i32
    return %arg0, %c0_i32, %arg1 : i32, i32, i32
  }
  func.func @transform_9(%arg0: i32, %arg1: i32) -> (i32, i32, i32) {
    %c0_i32 = arith.constant 0 : i32
    %c0_i32_0 = arith.constant 0 : i32
    return %arg0, %c0_i32, %arg1 : i32, i32, i32
  }
}

</mosaic_0001>

<bundles_post_ra>
// kernel: tpu_custom_call.1
= control target key start
LH: loop header
LB: loop body
LE: loop exit
PB: predicated region body
PF: predicated region fallthrough
CT: control target
= control target key end

     0   :  { %15 = vsyncpa [#allocation3], 0  ;;  %s1646_s0 = inlined_call_operand.vmem [shape: bf16[2,4,256], index: 0, kind: input, shape index: {}]   ;;  %s1647_s1 = inlined_call_operand.vmem [shape: bf16[32,4], index: 1, kind: input, shape index: {}]   ;;  %s1648_s2 = inlined_call_operand.vmem [shape: f32[32,1], index: 2, kind: input, shape index: {}]   ;;  %s1649_s3 = inlined_call_operand.vmem [shape: f32[32,1], index: 3, kind: input, shape index: {}]   ;;  %s1650_s4 = inlined_call_operand.vmem [shape: f32[32,2], index: 4, kind: input, shape index: {}]   ;;  %s1651_s5 = inlined_call_operand.vmem [shape: f32[32,1], index: 5, kind: input, shape index: {}]   ;;  %s1652_s6 = inlined_call_operand.vmem [shape: f32[32,1], index: 6, kind: input, shape index: {}]   ;;  %s1653_s7 = inlined_call_operand.vmem [shape: f32[2,256], index: 7, kind: input, shape index: {}]   ;;  %s1654_s8 = inlined_call_operand.hbm [shape: bf16[2,32,256], index: 8, kind: output, shape index: {0}]   ;;  %s1655_s9 = inlined_call_operand.hbm [shape: f32[2,32,256], index: 9, kind: output, shape index: {1}]  }
   0x1   :  { %17 = vsyncpa [#allocation3 + $0x1], 0 }
   0x2   :  { %18 = vsyncpa [#allocation5], 0 }
   0x3   :  { %20 = vsyncpa [#allocation5 + $0x1], 0  ;;  %s1328_s30 = smov 0   ;;  %s1330_s10 = smov 0  }
   0x4   :  { %s1332_s11 = smov 0   ;;  %s1334_s12 = smov 0  }
   0x5   :  { %s1336_s13 = smov 0   ;;  %s1338_s14 = smov 0  }
   0x6 LB: > { %s1014_s15 = sadd.s32 4294967295, %s1268_s14   ;;  %s1015_s16 = sadd.s32 4294967294, %s1268_s14   ;;  %s1268_s14 = sphi %s1338_s14, %s26_s14   ;;  %s1264_s13 = sphi %s1336_s13, %s1665_s13   ;;  %s1260_s12 = sphi %s1334_s12, %s1664_s12   ;;  %s1256_s11 = sphi %s1332_s11, %s1663_s11   ;;  %s1252_s10 = sphi %s1330_s10, %s1662_s10   ;;  %s1248_s30 = sphi %s1328_s30, %s1661_s30  }
   0x7   : > { %s38_s17 = sadd.s32 1, %s1264_s13  ;;  %s227_s18 = sadd.s32 1, %s1256_s11 }
   0x8   : > { %p40_p0 = scmp.ge.s32.totalorder %s38_s17, 2  ;;  %p237_p1 = scmp.ne.s32.totalorder %s1256_s11, %s1252_s10 }
   0x9   : > { %p238_p2 = scmp.eq.s32.totalorder %s1014_s15, 1  ;;  %p243_p3 = scmp.ne.s32.totalorder %s1252_s10, %s1248_s30 }
   0xa   : > { %s1667_s17 = smov (%p40_p0, %s38_s17), 0  ;;  %p244_p5 = scmp.eq.s32.totalorder %s1015_s16, 1 }
   0xb   : > { %1657 = sst [smem:[#allocation8_spill]] %s1667_s17  ;;  %p1368_p4 = por %p238_p2, %p237_p1 }
   0xc   : > { %s222_s20 = ssub.s32 %s1264_s13, %s1667_s17  ;;  %p1019_p6 = scmp.ge.s32.totalorder %s1268_s14, 1 }
   0xd   : > { %p225_p7 = scmp.eq.s32.totalorder %s222_s20, 0  ;;  %p1375_p8 = por %p244_p5, %p243_p3 }
   0xe   : > { %p330_p9 = scmp.lt.s32.totalorder %s1268_s14, 3 }
   0xf   : > { %s1381_s22 = scalar_select %p225_p7, %s1256_s11, %s227_s18  }
  0x10   : > { %p331_p10 = pnand %p1019_p6, %p330_p9 }
  0x11   : > { %p381_p11 = scmp.lt.s32.totalorder (!%p331_p10), %s1260_s12, 1  ;;  %v1270_v0 = vmov (!%p331_p10), 0   ;;  %v1034_v1 = vld.sshfl [vmem:[%s1653_s7] sm:$0x33 pattern:$0x76325410] (!%p331_p10) }
  0x12   : > { %334 = sbr.rel (%p331_p10) target bundleno = 324 (0x144), region = 52  ;;  %493 = vmatprep.mubr.bf16.mxu0 (!%p331_p10), %v1270_v0  ;;  %1123 = vset.pattern.permute.xlu1 (!%p331_p10), %v1270_v0  ;;  %v1271_v2 = vmov (!%p331_p10), 0.0   ;;  %vm454_vm0 = vcmask (!%p331_p10), 1041408   ;;  %v595_v3 = vcombine.high (!%p331_p10), %v1034_v1, %v1034_v1  ;;  %v406_v4 = vld [vmem:[%s1648_s2 + $0x10] sm:$0xff] (!%p331_p10)  ;;  %v404_v5 = vld [vmem:[%s1648_s2] sm:$0xff] (!%p331_p10)  ;;  %vm596_vm1 = vcmask (!%p331_p10), 15360  }
  0x13   : > { %1122 = vset.pattern.permute.xlu0 (!%p331_p10), %v1270_v0  ;;  %677 = vmatprep.mubr.f32.mxu1 (!%p331_p10), %v1271_v2  ;;  %v582_v6 = vld [vmem:[%s1650_s4] sm:$0xff] (!%p331_p10)  ;;  %v407_v10 = vld [vmem:[%s1648_s2 + $0x18] sm:$0xff] (!%p331_p10)  ;;  %v405_v11 = vld [vmem:[%s1648_s2 + $0x8] sm:$0xff] (!%p331_p10)  ;;  %vm447_vm2 = vcmask (!%p331_p10), 31744   ;;  %s1054_s29 = sshll.u32 (!%p331_p10), %s1260_s12, 9 }
  0x14   : > { %420 = vperm.xlu1 (!%p331_p10), %1123, %v406_v4   ;;  %410 = vperm.xlu0 (!%p331_p10), %1122, %v404_v5   ;;  %v1124_v12 = vld [vmem:[%s1647_s1] sm:$0xff] (!%p331_p10)   ;;  %v583_v13 = vld [vmem:[%s1650_s4 + $0x8] sm:$0xff] (!%p331_p10)  ;;  %v584_v16 = vld [vmem:[%s1650_s4 + $0x10] sm:$0xff] (!%p331_p10)  ;;  %s1512_s18 = scalar_lea.hbm (!%p331_p10), %s1654_s8, %s1054_s29 }
  0x15   : > { %1035 = vmatprep.subr.msk.mxu1 (!%p331_p10), %vm454_vm0, %v595_v3  ;;  %v735_v14 = vld [vmem:[%s1649_s3 + $0x8] sm:$0xff] (!%p331_p10)  ;;  %v734_v15 = vld [vmem:[%s1649_s3] sm:$0xff] (!%p331_p10)  ;;  %v737_v19 = vld [vmem:[%s1649_s3 + $0x18] sm:$0xff] (!%p331_p10) }
  0x16   : > { %1036 = vmatpush1.msk.msra.mxu1 (!%p331_p10), %vm454_vm0, %v1034_v1  ;;  %v775_v17 = vld [vmem:[%s1652_s6 + $0x8] sm:$0xff] (!%p331_p10)  ;;  %v774_v18 = vld [vmem:[%s1652_s6] sm:$0xff] (!%p331_p10)  ;;  %v736_v20 = vld [vmem:[%s1649_s3 + $0x10] sm:$0xff] (!%p331_p10) }
  0x17   : > { %1037 = vmatmul.mubr.msk.f32.vlgmr.msra.gmra.mrb[0].mxu1 (!%p331_p10), %vm596_vm1, %v582_v6  ;;  %vm779_vm3 = vcmp.gt.f32.partialorder (!%p331_p10), %v775_v17, 0.5  ;;  %v1125_v21 = vld [vmem:[%s1647_s1 + $0x8] sm:$0xff] (!%p331_p10)   ;;  %v585_v22 = vld [vmem:[%s1650_s4 + $0x18] sm:$0xff] (!%p331_p10)  ;;  %vm778_vm4 = vcmp.gt.f32.partialorder (!%p331_p10), %v774_v18, 0.5  ;;  %v776_v24 = vld [vmem:[%s1652_s6 + $0x10] sm:$0xff] (!%p331_p10) }
  0x18   : > { %683 = vmatprep.mubr.f32.mxu1 (!%p331_p10), %v1271_v2  ;;  %425 = vperm.xlu1 (!%p331_p10), %1123, %v407_v10   ;;  %v777_v23 = vld [vmem:[%s1652_s6 + $0x18] sm:$0xff] (!%p331_p10)  ;;  %v783_v25 = vsel (!%p331_p10), %vm779_vm3, 1, %v1270_v0  ;;  %v782_v26 = vsel (!%p331_p10), %vm778_vm4, 1, %v1270_v0  ;;  %vm780_vm6 = vcmp.gt.f32.partialorder (!%p331_p10), %v776_v24, 0.5  ;;  %v767_v27 = vld [vmem:[%s1651_s5 + $0x8] sm:$0xff] (!%p331_p10)  ;;  %v766_v28 = vld [vmem:[%s1651_s5] sm:$0xff] (!%p331_p10) }
  0x19   : > { %s382_s23 = scalar_select %p381_p11, %s1260_s12, 1  ;;  %415 = vperm.xlu0 %1122, %v405_v11   ;;  %vm781_vm5 = vcmp.gt.f32.partialorder %v777_v23, 0.5  ;;  %v784_v30 = vsel %vm780_vm6, 1, %v1270_v0  ;;  %vm771_vm7 = vcmp.gt.f32.partialorder %v767_v27, 0.5  ;;  %vm770_vm8 = vcmp.gt.f32.partialorder %v766_v28, 0.5  ;;  %v769_v31 = vld [vmem:[%s1651_s5 + $0x18] sm:$0xff] }
  0x1a   : > { %v785_v29 = vsel %vm781_vm5, 1, %v1270_v0  ;;  %v768_v32 = vld [vmem:[%s1651_s5 + $0x10] sm:$0xff]  ;;  %v811_v33 = vsel %vm771_vm7, 1, %v1270_v0  ;;  %v810_v34 = vsel %vm770_vm8, 1, %v1270_v0  ;;  %vm773_vm9 = vcmp.gt.f32.partialorder %v769_v31, 0.5 }
  0x1b   : > { %s1049_s26 = sshll.u32 %s382_s23, 2  ;;  %1038 = vmatmul.mubr.msk.f32.gmra.mrb[2].mxu1 %vm596_vm1, %v583_v13  ;;  %vm772_vm10 = vcmp.gt.f32.partialorder %v768_v32, 0.5  ;;  %v813_v35 = vsel %vm773_vm9, 1, %v1270_v0  ;;  %s1272_s23 = smov [#allocation2]  }
  0x1c   : > { %s388_s20 = scalar_lea.vmem %s1646_s0, %s1049_s26  ;;  %689 = vmatprep.mubr.f32.mxu1 %v1271_v2  ;;  %745 = vperm.xlu1 %1123, %v735_v14   ;;  %v812_v36 = vsel %vm772_vm10, 1, %v1270_v0  ;;  %s1484_s26 = sand.u32 1, %s1252_s10  }
  0x1d   : > { %v1026_v7 = vld.sshfl [vmem:[%s388_s20] sm:$0x33 pattern:$0x76325410]  ;;  %740 = vperm.xlu0 %1122, %v734_v15   ;;  %s1020_s17 = sshll.u32 %s1484_s26, 5  ;;  %s847_s20 = scalar_lea.sflag [#allocation3], %s1484_s26 }
  0x1e   : > { %v446_v8 = vcombine.high %v1026_v7, %v1026_v7  ;;  %v456_v9 = vsel %vm454_vm0, %v1026_v7, 0  ;;  %s1495_s27 = scalar_lea.vmem [#allocation2], %s1020_s17  ;;  %s1162_s25 = sshll.u32 %s1272_s23, 4  ;;  %s1163_s25 = int_to_ptr.vmem [resolvable:$false] %s1162_s25 }
  0x1f   : > { %1039 = vmatmul.mubr.msk.f32.gmra.mrb[4].mxu1 %vm596_vm1, %v584_v16  ;;  %s867_s28 = sshll.u32 %s1495_s27, 4  ;;  %s1164_s17 = scalar_lea.vmem %s1163_s25, 1024  ;;  %s1507_s28 = int_to_ptr.vmem [resolvable:$true] %s867_s28 }
  0x20   : > { %1027 = vmatprep.subr.msk.bf16.mxu0 %vm454_vm0, %v446_v8  ;;  %695 = vmatprep.mubr.f32.mxu1 %v1271_v2  ;;  %s1158_s24 = scalar_lea.vmem %s1507_s28, 512  ;;  %p1165_p1 = scmp.lt.s32.totalorder %s1507_s28, %s1163_s25 }
  0x21   : > { %462 = vmatpush1.bf16.msra.mxu0 %v456_v9  ;;  %755 = vperm.xlu1 %1123, %v737_v19   ;;  %p1159_p12 = scmp.ne.s32.totalorder %s1507_s28, %s1158_s24  ;;  %p1166_p2 = scmp.lt.s32.totalorder %s1164_s17, %s1158_s24 }
  0x22   : > { %750 = vperm.xlu0 %1122, %v736_v20  }
  0x23   : > { %1040 = vmatmul.mubr.msk.f32.gmra.mrb[6].mxu1 %vm596_vm1, %v585_v22  ;;  %p1160_p13 = pnand %p1159_p12, %p1368_p4  ;;  %p1167_p3 = por %p1166_p2, %p1165_p1 }
  0x24   : > { %1028 = vmatmul.mubr.msk.bf16.vlgmr.msra.gmra.mrb[0].mxu0 %vm447_vm2, %v1124_v12 }
  0x25   : > { %503 = vmatprep.mubr.bf16.mxu0 %v1270_v0  ;;  %790 = vperm.xlu1 %1123, %v783_v25   ;;  %p1161_p0 = pneg %p1160_p13 }
  0x26   : > { %787 = vperm.xlu0 %1122, %v782_v26  }
  0x27   : > { %p1168_p5 = pnand %p1167_p3, %p1161_p0 }
  0x29   : > { %796 = vperm.xlu1 %1123, %v785_v29  }
  0x2a   : > { %793 = vperm.xlu0 %1122, %v784_v30  }
  0x2c   : > { %1029 = vmatmul.mubr.msk.bf16.gmra.mrb[4].mxu0 %vm447_vm2, %v1125_v21 }
  0x2d   : > { %818 = vperm.xlu1 %1123, %v811_v33  }
  0x2e   : > { %815 = vperm.xlu0 %1122, %v810_v34  }
  0x31   : > { %824 = vperm.xlu1 %1123, %v813_v35  }
  0x32   : > { %821 = vperm.xlu0 %1122, %v812_v36  }
  0x93   : > { %v411_v38 = vpop.permute.xlu0 %410  ;;  %v421_v43 = vpop.permute.xlu1 %420 }
  0x97   : > { %v426_v62 = vpop.permute.xlu1 %425 }
  0x98   : > { %v416_v46 = vpop.permute.xlu0 %415 }
  0x9b   : > { %v1514_v17 = vpop.permute.xlu1 %745 }
  0x9c   : > { %v1505_v11 = vpop.permute.xlu0 %740 }
  0xea   : > { %v1479_v37 = vpop.f32.mrb[0].mxu1 }
  0xeb   : > { %v1481_v39 = vpop.f32.mrb[1].mxu1 }
  0xee   : > { %v1486_v40 = vpop.f32.mrb[2].mxu1 }
  0xef   : > { %v1489_v42 = vpop.f32.mrb[3].mxu1 }
  0xf2   : > { %v1491_v52 = vpop.f32.mrb[4].mxu1 }
  0xf3   : > { %v1493_v56 = vpop.f32.mrb[5].mxu1 }
  0xf6   : > { %v1498_v0 = vpop.f32.mrb[6].mxu1 }
  0xf7   : > { %v495_v41 = vpop.f32.mrb[0].mxu0  ;;  %v1501_v3 = vpop.f32.mrb[7].mxu1 }
  0xf8   : > { %v496_v44 = vadd.f32 %v495_v41, %v411_v38  ;;  %v497_v45 = vpop.f32.mrb[1].mxu0 }
  0xf9   : > { %v498_v47 = vadd.f32 %v497_v45, %v411_v38  ;;  %v499_v48 = vpop.f32.mrb[2].mxu0 }
  0xfa   : > { %v542_v49 = vsub.f32 0.0, %v496_v44  ;;  %v500_v50 = vadd.f32 %v499_v48, %v416_v46  ;;  %v501_v51 = vpop.f32.mrb[3].mxu0 }
  0xfb   : > { %v1050_v53 = vpack.c.bf16 %v498_v47, %v496_v44  ;;  %v543_v54 = vsub.f32 0.0, %v498_v47  ;;  %v502_v55 = vadd.f32 %v501_v51, %v416_v46 }
  0xfc   : > { %v550_v57 = vmul.f32 1.442695, %v542_v49  ;;  %v544_v58 = vsub.f32 0.0, %v500_v50 }
  0xfd   : > { %538 = vst [vmem:[%s1495_s27] sm:$0xff] %v1050_v53  ;;  %v552_v59 = vmul.f32 1.442695, %v543_v54  ;;  %v1051_v60 = vpack.c.bf16 %v502_v55, %v500_v50  ;;  %v545_v61 = vsub.f32 0.0, %v502_v55 }
  0xfe   : > { %1126 = vpow2.f32 %v550_v57  ;;  %v554_v63 = vmul.f32 1.442695, %v544_v58 }
  0xff   : > { %1128 = vpow2.f32 %v552_v59  ;;  %539 = vst [vmem:[%s1495_s27 + $0x8] sm:$0xff] %v1051_v60  ;;  %v556_v1 = vmul.f32 1.442695, %v545_v61  ;;  %v505_v2 = vpop.f32.mrb[4].mxu0 }
 0x100   : > { %1130 = vpow2.f32 %v554_v63  ;;  %v506_v4 = vadd.f32 %v505_v2, %v421_v43  ;;  %v507_v5 = vpop.f32.mrb[5].mxu0 }
 0x101   : > { %1132 = vpow2.f32 %v556_v1  ;;  %v508_v6 = vadd.f32 %v507_v5, %v421_v43  ;;  %v509_v7 = vpop.f32.mrb[6].mxu0 }
 0x102   : > { %v546_v8 = vsub.f32 0.0, %v506_v4  ;;  %v510_v9 = vadd.f32 %v509_v7, %v426_v62  ;;  %v511_v10 = vpop.f32.mrb[7].mxu0 }
 0x103   : > { %v1052_v12 = vpack.c.bf16 %v508_v6, %v506_v4  ;;  %v547_v13 = vsub.f32 0.0, %v508_v6  ;;  %v512_v14 = vadd.f32 %v511_v10, %v426_v62 }
 0x104   : > { %v558_v15 = vmul.f32 1.442695, %v546_v8  ;;  %v548_v16 = vsub.f32 0.0, %v510_v9 }
 0x105   : > { %540 = vst [vmem:[%s1495_s27 + $0x10] sm:$0xff] %v1052_v12  ;;  %v560_v18 = vmul.f32 1.442695, %v547_v13  ;;  %v1053_v19 = vpack.c.bf16 %v512_v14, %v510_v9  ;;  %v549_v20 = vsub.f32 0.0, %v512_v14 }
 0x106   : > { %1134 = vpow2.f32 %v558_v15  ;;  %v562_v21 = vmul.f32 1.442695, %v548_v16 }
 0x107   : > { %1136 = vpow2.f32 %v560_v18  ;;  %541 = vst [vmem:[%s1495_s27 + $0x18] sm:$0xff] %v1053_v19  ;;  %v564_v22 = vmul.f32 1.442695, %v549_v20 }
 0x108   : > { %v1127_v23 = vpop.eup %1126  ;;  %1138 = vpow2.f32 %v562_v21 }
 0x109   : > { %1171 = shalt.err (!%p1168_p5)
}
 0x10a   : > { %s1172_s27 = scalar_lea.hbm %s1512_s18, 512  ;;  %s1176_s16 = scalar_lea.hbm %s1654_s8, 1024 }
 0x10b   : > { %p1173_p6 = scmp.ne.s32.totalorder %s1512_s18, %s1172_s27  ;;  %p1177_p10 = scmp.lt.u32.totalorder %s1512_s18, %s1654_s8 }
 0x10c   : > { %p1178_p11 = scmp.lt.u32.totalorder %s1176_s16, %s1172_s27  ;;  %p1180_p13 = scmp.lt.u32.totalorder %s1172_s27, %s1512_s18 }
 0x10d   : > { %p1174_p7 = pnand %p1173_p6, %p1368_p4 }
 0x10e   : > { %p1179_p12 = por %p1178_p11, %p1177_p10 }
 0x10f   : > { %p1175_p9 = pneg %p1174_p7 }
 0x110   : > { %p1181_p0 = por %p1180_p13, %p1179_p12 }
 0x112   : > { %p1182_p1 = pnand %p1181_p0, %p1175_p9 }
 0x114   : > { %1185 = shalt.err (!%p1182_p1)
}
 0x115   : > { %s1273_s24 = smov 128   ;;  %s1274_s17 = smov 8   ;;  %v1129_v24 = vpop.eup %1128  ;;  %v1542_v25 = vpop.permute.xlu0 %750  ;;  %v566_v26 = vadd.f32 1.0, %v1127_v23  ;;  %1140 = vpow2.f32 %v564_v22 }
 0x116   : > { %1056 = dma.vmem_to_hbm [thread:$0]  (%p1368_p4), %s1507_s28, 512, %s1512_s18, %s847_s20, %s1273_s24, %s1273_s24, %s1274_s17   ;;  %v1131_v27 = vpop.eup %1130  ;;  %v567_v28 = vadd.f32 1.0, %v1129_v24  ;;  %v1544_v30 = vpop.permute.xlu1 %755 }
 0x117   : > { %v1133_v29 = vpop.eup %1132  ;;  %1142 = vrcp.f32 %v566_v26  ;;  %v568_v31 = vadd.f32 1.0, %v1131_v27  ;;  %s1021_s28 = sshll.u32 %s1484_s26, 6  ;;  %s1055_s27 = sshll.u32 %s1260_s12, 10 }
 0x118   : > { %1144 = vrcp.f32 %v567_v28  ;;  %v569_v32 = vadd.f32 1.0, %v1133_v29  ;;  %v1135_v34 = vpop.eup %1134  ;;  %s1561_s18 = scalar_lea.vmem [#allocation4], %s1021_s28  ;;  %s1593_s15 = scalar_lea.hbm %s1655_s9, %s1055_s27 }
 0x119   : > { %1146 = vrcp.f32 %v568_v31  ;;  %v788_v33 = vpop.permute.xlu0 %787  ;;  %v1137_v35 = vpop.eup %1136  ;;  %v570_v38 = vadd.f32 1.0, %v1135_v34  ;;  %s885_s20 = sshll.u32 %s1561_s18, 4  ;;  %s852_s16 = scalar_lea.sflag [#allocation5], %s1484_s26  ;;  %s1585_s20 = int_to_ptr.vmem [resolvable:$true] %s885_s20 }
 0x11a   : > { %1148 = vrcp.f32 %v569_v32  ;;  %v791_v36 = vpop.permute.xlu1 %790  ;;  %v1139_v41 = vpop.eup %1138  ;;  %v571_v43 = vadd.f32 1.0, %v1137_v35  ;;  %vm798_vm12 = vcmp.eq.s32.totalorder %v788_v33, 1  ;;  %s1186_s23 = scalar_lea.vmem %s1585_s20, 1024  ;;  %s1275_s25 = smov [#allocation4]  }
 0x11b   : > { %1150 = vrcp.f32 %v570_v38  ;;  %v572_v45 = vadd.f32 1.0, %v1139_v41  ;;  %vm799_vm11 = vcmp.eq.s32.totalorder %v791_v36, 1  ;;  %p1187_p2 = scmp.ne.s32.totalorder %s1585_s20, %s1186_s23  ;;  %s1190_s24 = sshll.u32 %s1275_s25, 4  ;;  %s1191_s24 = int_to_ptr.vmem [resolvable:$false] %s1190_s24 }
 0x11c   : > { %1152 = vrcp.f32 %v571_v43  ;;  %s1192_s17 = scalar_lea.vmem %s1191_s24, 2048  ;;  %p1193_p6 = scmp.lt.s32.totalorder %s1585_s20, %s1191_s24 }
 0x11d   : > { %v1546_v48 = vpop.permute.xlu0 %793  ;;  %1154 = vrcp.f32 %v572_v45  ;;  %p1188_p3 = pnand %p1187_p2, %p1368_p4  ;;  %p1194_p7 = scmp.lt.s32.totalorder %s1192_s17, %s1186_s23 }
 0x11e   : > { %v1548_v53 = vpop.permute.xlu1 %796  ;;  %vm800_vm0 = vcmp.eq.s32.totalorder %v1546_v48, 1 }
 0x11f   : > { %v1141_v44 = vpop.eup %1140  ;;  %vm801_vm15 = vcmp.eq.s32.totalorder %v1548_v53, 1  ;;  %p1189_p5 = pneg %p1188_p3  ;;  %p1195_p9 = por %p1194_p7, %p1193_p6 }
 0x120   : > { %v573_v46 = vadd.f32 1.0, %v1141_v44 }
 0x121   : > { %v1143_v47 = vpop.eup %1142  ;;  %v816_v5 = vpop.permute.xlu0 %815  ;;  %p1196_p10 = pnand %p1195_p9, %p1189_p5 }
 0x122   : > { %v1145_v49 = vpop.eup %1144  ;;  %1156 = vrcp.f32 %v573_v46  ;;  %v702_v50 = vmul.f32 2.0, %v1143_v47  ;;  %vm826_vm13 = vcmp.eq.s32.totalorder %v816_v5, 1  ;;  %v819_v13 = vpop.permute.xlu1 %818 }
 0x123   : > { %v1147_v51 = vpop.eup %1146  ;;  %v703_v54 = vmul.f32 2.0, %v1145_v49  ;;  %vm827_vm14 = vcmp.eq.s32.totalorder %v819_v13, 1 }
 0x124   : > { %v1149_v55 = vpop.eup %1148  ;;  %v710_v57 = vadd.f32 %v702_v50, %v1479_v37  ;;  %v726_v58 = vmul.f32 %v702_v50, %v702_v50  ;;  %v704_v59 = vmul.f32 2.0, %v1147_v51 }
 0x125   : > { %v711_v60 = vadd.f32 %v703_v54, %v1481_v39  ;;  %v727_v61 = vmul.f32 %v703_v54, %v703_v54  ;;  %v705_v62 = vmul.f32 2.0, %v1149_v55  ;;  %v1151_v12 = vpop.eup %1150  ;;  %v822_v29 = vpop.permute.xlu0 %821 }
 0x126   : > { %v718_v63 = vmul.f32 8.0, %v710_v57  ;;  %v758_v1 = vmul.f32 %v1505_v11, %v726_v58  ;;  %v712_v2 = vadd.f32 %v704_v59, %v1486_v40  ;;  %v728_v4 = vmul.f32 %v704_v59, %v704_v59  ;;  %v1153_v18 = vpop.eup %1152  ;;  %v825_v41 = vpop.permute.xlu1 %824 }
 0x127   : > { %v719_v6 = vmul.f32 8.0, %v711_v60  ;;  %v759_v7 = vmul.f32 %v1505_v11, %v727_v61  ;;  %v713_v8 = vadd.f32 %v705_v62, %v1489_v42  ;;  %v729_v37 = vmul.f32 %v705_v62, %v705_v62  ;;  %v1155_v20 = vpop.eup %1154 }
 0x128   : > { %v802_v9 = vsel %vm798_vm12, %v758_v1, %v1143_v47  ;;  %v720_v10 = vmul.f32 8.0, %v712_v2  ;;  %v760_v39 = vmul.f32 %v1514_v17, %v728_v4  ;;  %v706_v19 = vmul.f32 2.0, %v1151_v12 }
 0x129   : > { %v830_v14 = vsel %vm826_vm13, %v718_v63, %v802_v9  ;;  %v803_v15 = vsel %vm798_vm12, %v759_v7, %v1145_v49  ;;  %v721_v40 = vmul.f32 8.0, %v713_v8  ;;  %v761_v16 = vmul.f32 %v1514_v17, %v729_v37 }
 0x12a   : > { %838 = vst [vmem:[%s1561_s18] sm:$0xff] %v830_v14  ;;  %v831_v42 = vsel %vm826_vm13, %v719_v6, %v803_v15  ;;  %v804_v11 = vsel %vm799_vm11, %v760_v39, %v1147_v51  ;;  %v707_v22 = vmul.f32 2.0, %v1153_v18  ;;  %v714_v26 = vadd.f32 %v706_v19, %v1491_v52 }
 0x12b   : > { %839 = vst [vmem:[%s1561_s18 + $0x8] sm:$0xff] %v831_v42  ;;  %v832_v21 = vsel %vm827_vm14, %v720_v10, %v804_v11  ;;  %v805_v17 = vsel %vm799_vm11, %v761_v16, %v1149_v55  ;;  %v730_v27 = vmul.f32 %v706_v19, %v706_v19  ;;  %v708_v28 = vmul.f32 2.0, %v1155_v20 }
 0x12c   : > { %v1157_v23 = vpop.eup %1156  ;;  %840 = vst [vmem:[%s1561_s18 + $0x10] sm:$0xff] %v832_v21  ;;  %v833_v24 = vsel %vm827_vm14, %v721_v40, %v805_v17  ;;  %v715_v31 = vadd.f32 %v707_v22, %v1493_v56  ;;  %v731_v32 = vmul.f32 %v707_v22, %v707_v22  ;;  %v722_v34 = vmul.f32 8.0, %v714_v26 }
 0x12d   : > { %841 = vst [vmem:[%s1561_s18 + $0x18] sm:$0xff] %v833_v24  ;;  %v709_v33 = vmul.f32 2.0, %v1157_v23  ;;  %v762_v35 = vmul.f32 %v1542_v25, %v730_v27  ;;  %v716_v36 = vadd.f32 %v708_v28, %v1498_v0  ;;  %v732_v38 = vmul.f32 %v708_v28, %v708_v28 }
 0x12e   : > { %v723_v52 = vmul.f32 8.0, %v715_v31  ;;  %v763_v43 = vmul.f32 %v1542_v25, %v731_v32  ;;  %vm828_vm1 = vcmp.eq.s32.totalorder %v822_v29, 1  ;;  %vm829_vm2 = vcmp.eq.s32.totalorder %v825_v41, 1 }
 0x12f   : > { %v717_v44 = vadd.f32 %v709_v33, %v1501_v3  ;;  %v733_v45 = vmul.f32 %v709_v33, %v709_v33  ;;  %v806_v56 = vsel %vm800_vm0, %v762_v35, %v1151_v12  ;;  %v724_v46 = vmul.f32 8.0, %v716_v36 }
 0x130   : > { %v764_v0 = vmul.f32 %v1544_v30, %v732_v38  ;;  %v834_v47 = vsel %vm828_vm1, %v722_v34, %v806_v56  ;;  %v807_v49 = vsel %vm800_vm0, %v763_v43, %v1153_v18 }
 0x131   : > { %v725_v25 = vmul.f32 8.0, %v717_v44  ;;  %v765_v3 = vmul.f32 %v1544_v30, %v733_v45  ;;  %842 = vst [vmem:[%s1561_s18 + $0x20] sm:$0xff] %v834_v47  ;;  %v835_v50 = vsel %vm828_vm1, %v723_v52, %v807_v49 }
 0x132   : > { %v808_v51 = vsel %vm801_vm15, %v764_v0, %v1155_v20  ;;  %843 = vst [vmem:[%s1561_s18 + $0x28] sm:$0xff] %v835_v50 }
 0x133   : > { %v836_v48 = vsel %vm829_vm2, %v724_v46, %v808_v51  ;;  %v809_v30 = vsel %vm801_vm15, %v765_v3, %v1157_v23 }
 0x134   : > { %844 = vst [vmem:[%s1561_s18 + $0x30] sm:$0xff] %v836_v48  ;;  %v837_v54 = vsel %vm829_vm2, %v725_v25, %v809_v30 }
 0x135   : > { %845 = vst [vmem:[%s1561_s18 + $0x38] sm:$0xff] %v837_v54 }
 0x136   : > { %1199 = shalt.err (!%p1196_p10)
}
 0x137   : > { %s1200_s28 = scalar_lea.hbm %s1593_s15, 1024  ;;  %s1204_s12 = scalar_lea.hbm %s1655_s9, 2048 }
 0x138   : > { %p1201_p11 = scmp.ne.s32.totalorder %s1593_s15, %s1200_s28  ;;  %p1205_p0 = scmp.lt.u32.totalorder %s1593_s15, %s1655_s9 }
 0x139   : > { %p1206_p1 = scmp.lt.u32.totalorder %s1204_s12, %s1200_s28  ;;  %p1208_p3 = scmp.lt.u32.totalorder %s1200_s28, %s1593_s15 }
 0x13a   : > { %p1202_p12 = pnand %p1201_p11, %p1368_p4 }
 0x13b   : > { %p1207_p2 = por %p1206_p1, %p1205_p0 }
 0x13c   : > { %p1203_p13 = pneg %p1202_p12 }
 0x13d   : > { %p1209_p5 = por %p1208_p3, %p1207_p2 }
 0x13f   : > { %p1210_p6 = pnand %p1209_p5, %p1203_p13 }
 0x141   : > { %1213 = shalt.err (!%p1210_p6)
}
 0x142   : > { %s1276_s23 = smov 256   ;;  %s1277_s24 = smov 16  }
 0x143   : > { %1057 = dma.vmem_to_hbm [thread:$0]  (%p1368_p4), %s1585_s20, 1024, %s1593_s15, %s852_s16, %s1276_s23, %s1276_s23, %s1277_s24  }
 0x144 PF: > { %p1067_p7 = scmp.ge.s32.totalorder %s1268_s14, 2  ;;  %s900_s17 = sand.u32 1, %s1248_s30  }
 0x145   : > { %s901_s28 = scalar_lea.sflag [#allocation3], %s900_s17 }
 0x146   : > { %p1061_p9 = pnand %p1067_p7, %p1375_p8 }
 0x148   : > { %1239 = dma.done.wait (!%p1061_p9), %s901_s28, 512  }
 0x149   : > { %1241 = vsyncadd (!%p1061_p9), %s901_s28, 4294966784  ;;  %s910_s18 = scalar_lea.sflag [#allocation5], %s900_s17 }
 0x14a   : > { %1243 = dma.done.wait (!%p1061_p9), %s910_s18, 1024  }
 0x14b   : > { %1245 = vsyncadd (!%p1061_p9), %s910_s18, 4294966272  ;;  %s26_s14 = sadd.s32 1, %s1268_s14   ;;  %s1660_s19 = sld [smem:[#allocation8_spill]] }
 0x14c   : > { %p23_p10 = scmp.ge.s32.totalorder %s26_s14, 4   ;;  %s1661_s30 = smov %s1252_s10 }
 0x14d   : > { %s1662_s10 = smov %s1256_s11  ;;  %s1663_s11 = smov %s1381_s22 }
 0x14e   : > { %s1664_s12 = smov %s1264_s13  ;;  %25 = sbr.rel (!%p23_p10) target bundleno = 6 (0x6), region = 107 }
 0x151   : > { %s1665_s13 = smov %s1660_s19 }
 0x155   :  { %915 = vsyncpa [#allocation3], 1 }
 0x156   :  { %917 = vsyncpa [#allocation3 + $0x1], 1 }
 0x157   :  { %918 = vsyncpa [#allocation5], 1 }
 0x158   :  { %920 = vsyncpa [#allocation5 + $0x1], 1 }

</bundles_post_ra>
